<compile_context>
chip_gen: v7x
topology: tpu7x:2x2x1
jax: 0.10.0
libtpu: 0.0.40
codegen_flags: <defaults>
</compile_context>

<pallas_src>
import jax
import jax.numpy as jnp
from jax.experimental import pallas as pl
from jax.experimental.pallas import tpu as pltpu

# Small, deterministic problem sizes (CartPole-like env).
N_STATES = 4      # env.observation_space.shape[0]
N_ACTIONS = 2     # env.action_space.n
HIDDEN = 10
BATCH = 8

_LANES = 128
_BLOCK_ROWS = 32          # sublane rows per grid step -> 4096 batch rows/step
_SMALL_BATCH = 512        # below this, fused XLA beats any custom call


def _net_kernel(x_ref, w1_ref, b1_ref, w2_ref, b2_ref, o_ref):
    """x_ref: (N_STATES, R, 128) VMEM; params: flat f32 in SMEM;
    o_ref: (N_ACTIONS, R, 128) VMEM.  The batch lives in the (R, 128) slab."""
    # Load the N_STATES input slabs once: dense vregs, 100% lane/sublane use.
    x_rows = [x_ref[k] for k in range(N_STATES)]
    r, l = x_rows[0].shape

    # Output accumulators with the bias fused into the init (scalar splat
    # from SMEM -- no XLU broadcast, no VMEM weight tile).
    acc = [jnp.full((r, l), b2_ref[a], dtype=jnp.float32)
           for a in range(N_ACTIONS)]

    # Stream hidden units one at a time so only one hidden slab is live.
    for j in range(HIDDEN):                        # unrolled, 10 iterations
        hj = w1_ref[j * N_STATES] * x_rows[0]
        for k in range(1, N_STATES):               # unrolled, 3 iterations
            hj = hj + w1_ref[j * N_STATES + k] * x_rows[k]
        hj = jnp.maximum(hj + b1_ref[j], 0.0)      # bias + ReLU
        for a in range(N_ACTIONS):                 # unrolled, 2 iterations
            acc[a] = acc[a] + w2_ref[a * HIDDEN + j] * hj

    for a in range(N_ACTIONS):
        o_ref[a] = acc[a]                          # dense, unmasked stores


def prepare_params(w1, b1, w2, b2):
    """One-time re-layout of PyTorch-layout params (W: [out, in]) into flat
    1-D f32 arrays for SMEM residency.  Call once at init, not per forward."""
    return (jnp.asarray(w1, jnp.float32).reshape(-1),   # (HIDDEN*N_STATES,)
            jnp.asarray(b1, jnp.float32).reshape(-1),   # (HIDDEN,)
            jnp.asarray(w2, jnp.float32).reshape(-1),   # (N_ACTIONS*HIDDEN,)
            jnp.asarray(b2, jnp.float32).reshape(-1))   # (N_ACTIONS,)


def _net_pallas(xt3, w1f, b1f, w2f, b2f, block_rows):
    _, nrows, lanes = xt3.shape
    grid = (pl.cdiv(nrows, block_rows),)
    smem = pl.BlockSpec(memory_space=pltpu.MemorySpace.SMEM)
    return pl.pallas_call(
        _net_kernel,
        out_shape=jax.ShapeDtypeStruct((N_ACTIONS, nrows, lanes), jnp.float32),
        grid=grid,
        in_specs=[
            pl.BlockSpec((N_STATES, block_rows, lanes), lambda i: (0, i, 0)),
            smem, smem, smem, smem,
        ],
        out_specs=pl.BlockSpec((N_ACTIONS, block_rows, lanes),
                               lambda i: (0, i, 0)),
        compiler_params=pltpu.CompilerParams(
            dimension_semantics=("parallel",)),
    )(xt3, w1f, b1f, w2f, b2f)


def net_forward(x, params, *, block_rows=_BLOCK_ROWS, use_pallas=None):
    """x: [B, N_STATES] f32 -> [B, N_ACTIONS] f32.
    Computes relu(x @ W1.T + b1) @ W2.T + b2, identical to the nn.Module."""
    w1f, b1f, w2f, b2f = params
    x = jnp.asarray(x, jnp.float32)
    batch = x.shape[0]

    if use_pallas is None:
        use_pallas = batch > _SMALL_BATCH
    if not use_pallas:
        # Act-selection path: ~100 FLOPs/row -- custom-call dispatch dwarfs
        # compute on every TPU generation, so let XLA fuse the whole net.
        w1 = w1f.reshape(HIDDEN, N_STATES)
        w2 = w2f.reshape(N_ACTIONS, HIDDEN)
        h = jnp.maximum(x @ w1.T + b1f, 0.0)
        return h @ w2.T + b2f

    # Batch-in-lanes layout (layout plumbing only, no compute hoisted):
    # pad the batch to a multiple of 8*128 so sublane rows stay 8-aligned,
    # then view the batch as (rows, 128 lanes).
    pad_to = 8 * _LANES
    padded = ((batch + pad_to - 1) // pad_to) * pad_to
    xp = jnp.pad(x, ((0, padded - batch), (0, 0)))
    nrows = padded // _LANES
    xt3 = xp.T.reshape(N_STATES, nrows, _LANES)

    block_rows = min(block_rows, nrows)
    out3 = _net_pallas(xt3, w1f, b1f, w2f, b2f, block_rows)
    out = out3.reshape(N_ACTIONS, padded).T
    return out[:batch]


def init_params(key):
    """Deterministic init mirroring the module's __init__ shapes.
    fc1.weight / out.weight ~ N(0, 0.1); biases small uniform (synthetic)."""
    k1, k2, k3, k4 = jax.random.split(key, 4)
    w1 = 0.1 * jax.random.normal(k1, (HIDDEN, N_STATES), dtype=jnp.float32)
    b1 = (jax.random.uniform(k2, (HIDDEN,), dtype=jnp.float32) - 0.5) * (
        2.0 / N_STATES ** 0.5)
    w2 = 0.1 * jax.random.normal(k3, (N_ACTIONS, HIDDEN), dtype=jnp.float32)
    b2 = (jax.random.uniform(k4, (N_ACTIONS,), dtype=jnp.float32) - 0.5) * (
        2.0 / HIDDEN ** 0.5)
    return w1, b1, w2, b2


def reference_forward(x, w1, b1, w2, b2):
    h = jnp.maximum(x @ w1.T + b1, 0.0)
    return h @ w2.T + b2


if __name__ == "__main__":
    key = jax.random.PRNGKey(0)
    kx1, kx2, kx3, kp = jax.random.split(key, 4)
    w1, b1, w2, b2 = init_params(kp)
    params = prepare_params(w1, b1, w2, b2)

    # 1) Act-selection sized batch -> fused-XLA fast path (no custom call).
    x_small = jax.random.normal(kx1, (BATCH, N_STATES), dtype=jnp.float32)
    out_s = jax.block_until_ready(net_forward(x_small, params))
    assert out_s.shape == (BATCH, N_ACTIONS)
    assert jnp.allclose(out_s, reference_forward(x_small, w1, b1, w2, b2),
                        atol=1e-5, rtol=1e-5)

    # 2) Training batch that is NOT a multiple of the tile -> Pallas path,
    #    batch padded to the 8*128 layout, single grid step.
    x_odd = jax.random.normal(kx2, (2000, N_STATES), dtype=jnp.float32)
    out_o = jax.block_until_ready(net_forward(x_odd, params, use_pallas=True))
    assert out_o.shape == (2000, N_ACTIONS)
    assert jnp.allclose(out_o, reference_forward(x_odd, w1, b1, w2, b2),
                        atol=1e-5, rtol=1e-5)

    # 3) Larger batch -> 2 'parallel' grid steps (megacore / v7x dual-TC).
    x_big = jax.random.normal(kx3, (8192, N_STATES), dtype=jnp.float32)
    out_b = jax.block_until_ready(net_forward(x_big, params, use_pallas=True))
    assert out_b.shape == (8192, N_ACTIONS)
    assert jnp.allclose(out_b, reference_forward(x_big, w1, b1, w2, b2),
                        atol=1e-5, rtol=1e-5)

    print("KERNEL_OK")
</pallas_src>

<mosaic_0001>
module attributes {stable_mosaic.version = 11 : i64} {
  func.func @_net_kernel(%arg0: i32, %arg1: memref<4x16x128xf32, #tpu.memory_space<vmem>>, %arg2: memref<40xf32, #tpu.memory_space<smem>>, %arg3: memref<10xf32, #tpu.memory_space<smem>>, %arg4: memref<20xf32, #tpu.memory_space<smem>>, %arg5: memref<2xf32, #tpu.memory_space<smem>>, %arg6: memref<2x16x128xf32, #tpu.memory_space<vmem>>) attributes {dimension_semantics = [#tpu.dimension_semantics<parallel>], iteration_bounds = array<i64: 1>, scalar_prefetch = 0 : i64, scratch_operands = 0 : i64, tpu.core_type = #tpu.core_type<tc>, window_params = [{transform_indices = @transform_0, window_bounds = array<i64: 4, 16, 128>}, {transform_indices = @transform_1, window_bounds = array<i64: 40>}, {transform_indices = @transform_2, window_bounds = array<i64: 10>}, {transform_indices = @transform_3, window_bounds = array<i64: 20>}, {transform_indices = @transform_4, window_bounds = array<i64: 2>}, {transform_indices = @transform_5, window_bounds = array<i64: 2, 16, 128>}]} {
    %c0 = arith.constant 0 : index
    %c0_0 = arith.constant 0 : index
    %c0_1 = arith.constant 0 : index
    %0 = vector.load %arg1[%c0, %c0_0, %c0_1] : memref<4x16x128xf32, #tpu.memory_space<vmem>>, vector<1x16x128xf32>
    %1 = vector.shape_cast %0 : vector<1x16x128xf32> to vector<16x128xf32>
    %c1 = arith.constant 1 : index
    %c0_2 = arith.constant 0 : index
    %c0_3 = arith.constant 0 : index
    %2 = vector.load %arg1[%c1, %c0_2, %c0_3] : memref<4x16x128xf32, #tpu.memory_space<vmem>>, vector<1x16x128xf32>
    %3 = vector.shape_cast %2 : vector<1x16x128xf32> to vector<16x128xf32>
    %c2 = arith.constant 2 : index
    %c0_4 = arith.constant 0 : index
    %c0_5 = arith.constant 0 : index
    %4 = vector.load %arg1[%c2, %c0_4, %c0_5] : memref<4x16x128xf32, #tpu.memory_space<vmem>>, vector<1x16x128xf32>
    %5 = vector.shape_cast %4 : vector<1x16x128xf32> to vector<16x128xf32>
    %c3 = arith.constant 3 : index
    %c0_6 = arith.constant 0 : index
    %c0_7 = arith.constant 0 : index
    %6 = vector.load %arg1[%c3, %c0_6, %c0_7] : memref<4x16x128xf32, #tpu.memory_space<vmem>>, vector<1x16x128xf32>
    %7 = vector.shape_cast %6 : vector<1x16x128xf32> to vector<16x128xf32>
    %c0_8 = arith.constant 0 : index
    %8 = memref.load %arg5[%c0_8] : memref<2xf32, #tpu.memory_space<smem>>
    %9 = vector.broadcast %8 : f32 to vector<16x128xf32>
    %c1_9 = arith.constant 1 : index
    %10 = memref.load %arg5[%c1_9] : memref<2xf32, #tpu.memory_space<smem>>
    %11 = vector.broadcast %10 : f32 to vector<16x128xf32>
    %c0_10 = arith.constant 0 : index
    %12 = memref.load %arg2[%c0_10] : memref<40xf32, #tpu.memory_space<smem>>
    %13 = vector.broadcast %12 : f32 to vector<16x128xf32>
    %14 = arith.mulf %13, %1 : vector<16x128xf32>
    %c1_11 = arith.constant 1 : index
    %15 = memref.load %arg2[%c1_11] : memref<40xf32, #tpu.memory_space<smem>>
    %16 = vector.broadcast %15 : f32 to vector<16x128xf32>
    %17 = arith.mulf %16, %3 : vector<16x128xf32>
    %18 = arith.addf %14, %17 : vector<16x128xf32>
    %c2_12 = arith.constant 2 : index
    %19 = memref.load %arg2[%c2_12] : memref<40xf32, #tpu.memory_space<smem>>
    %20 = vector.broadcast %19 : f32 to vector<16x128xf32>
    %21 = arith.mulf %20, %5 : vector<16x128xf32>
    %22 = arith.addf %18, %21 : vector<16x128xf32>
    %c3_13 = arith.constant 3 : index
    %23 = memref.load %arg2[%c3_13] : memref<40xf32, #tpu.memory_space<smem>>
    %24 = vector.broadcast %23 : f32 to vector<16x128xf32>
    %25 = arith.mulf %24, %7 : vector<16x128xf32>
    %26 = arith.addf %22, %25 : vector<16x128xf32>
    %c0_14 = arith.constant 0 : index
    %27 = memref.load %arg3[%c0_14] : memref<10xf32, #tpu.memory_space<smem>>
    %28 = vector.broadcast %27 : f32 to vector<16x128xf32>
    %29 = arith.addf %26, %28 : vector<16x128xf32>
    %cst = arith.constant 0.000000e+00 : f32
    %30 = vector.broadcast %cst : f32 to vector<16x128xf32>
    %31 = arith.maximumf %29, %30 : vector<16x128xf32>
    %c0_15 = arith.constant 0 : index
    %32 = memref.load %arg4[%c0_15] : memref<20xf32, #tpu.memory_space<smem>>
    %33 = vector.broadcast %32 : f32 to vector<16x128xf32>
    %34 = arith.mulf %33, %31 : vector<16x128xf32>
    %35 = arith.addf %9, %34 : vector<16x128xf32>
    %c10 = arith.constant 10 : index
    %36 = memref.load %arg4[%c10] : memref<20xf32, #tpu.memory_space<smem>>
    %37 = vector.broadcast %36 : f32 to vector<16x128xf32>
    %38 = arith.mulf %37, %31 : vector<16x128xf32>
    %39 = arith.addf %11, %38 : vector<16x128xf32>
    %c4 = arith.constant 4 : index
    %40 = memref.load %arg2[%c4] : memref<40xf32, #tpu.memory_space<smem>>
    %41 = vector.broadcast %40 : f32 to vector<16x128xf32>
    %42 = arith.mulf %41, %1 : vector<16x128xf32>
    %c5 = arith.constant 5 : index
    %43 = memref.load %arg2[%c5] : memref<40xf32, #tpu.memory_space<smem>>
    %44 = vector.broadcast %43 : f32 to vector<16x128xf32>
    %45 = arith.mulf %44, %3 : vector<16x128xf32>
    %46 = arith.addf %42, %45 : vector<16x128xf32>
    %c6 = arith.constant 6 : index
    %47 = memref.load %arg2[%c6] : memref<40xf32, #tpu.memory_space<smem>>
    %48 = vector.broadcast %47 : f32 to vector<16x128xf32>
    %49 = arith.mulf %48, %5 : vector<16x128xf32>
    %50 = arith.addf %46, %49 : vector<16x128xf32>
    %c7 = arith.constant 7 : index
    %51 = memref.load %arg2[%c7] : memref<40xf32, #tpu.memory_space<smem>>
    %52 = vector.broadcast %51 : f32 to vector<16x128xf32>
    %53 = arith.mulf %52, %7 : vector<16x128xf32>
    %54 = arith.addf %50, %53 : vector<16x128xf32>
    %c1_16 = arith.constant 1 : index
    %55 = memref.load %arg3[%c1_16] : memref<10xf32, #tpu.memory_space<smem>>
    %56 = vector.broadcast %55 : f32 to vector<16x128xf32>
    %57 = arith.addf %54, %56 : vector<16x128xf32>
    %cst_17 = arith.constant 0.000000e+00 : f32
    %58 = vector.broadcast %cst_17 : f32 to vector<16x128xf32>
    %59 = arith.maximumf %57, %58 : vector<16x128xf32>
    %c1_18 = arith.constant 1 : index
    %60 = memref.load %arg4[%c1_18] : memref<20xf32, #tpu.memory_space<smem>>
    %61 = vector.broadcast %60 : f32 to vector<16x128xf32>
    %62 = arith.mulf %61, %59 : vector<16x128xf32>
    %63 = arith.addf %35, %62 : vector<16x128xf32>
    %c11 = arith.constant 11 : index
    %64 = memref.load %arg4[%c11] : memref<20xf32, #tpu.memory_space<smem>>
    %65 = vector.broadcast %64 : f32 to vector<16x128xf32>
    %66 = arith.mulf %65, %59 : vector<16x128xf32>
    %67 = arith.addf %39, %66 : vector<16x128xf32>
    %c8 = arith.constant 8 : index
    %68 = memref.load %arg2[%c8] : memref<40xf32, #tpu.memory_space<smem>>
    %69 = vector.broadcast %68 : f32 to vector<16x128xf32>
    %70 = arith.mulf %69, %1 : vector<16x128xf32>
    %c9 = arith.constant 9 : index
    %71 = memref.load %arg2[%c9] : memref<40xf32, #tpu.memory_space<smem>>
    %72 = vector.broadcast %71 : f32 to vector<16x128xf32>
    %73 = arith.mulf %72, %3 : vector<16x128xf32>
    %74 = arith.addf %70, %73 : vector<16x128xf32>
    %c10_19 = arith.constant 10 : index
    %75 = memref.load %arg2[%c10_19] : memref<40xf32, #tpu.memory_space<smem>>
    %76 = vector.broadcast %75 : f32 to vector<16x128xf32>
    %77 = arith.mulf %76, %5 : vector<16x128xf32>
    %78 = arith.addf %74, %77 : vector<16x128xf32>
    %c11_20 = arith.constant 11 : index
    %79 = memref.load %arg2[%c11_20] : memref<40xf32, #tpu.memory_space<smem>>
    %80 = vector.broadcast %79 : f32 to vector<16x128xf32>
    %81 = arith.mulf %80, %7 : vector<16x128xf32>
    %82 = arith.addf %78, %81 : vector<16x128xf32>
    %c2_21 = arith.constant 2 : index
    %83 = memref.load %arg3[%c2_21] : memref<10xf32, #tpu.memory_space<smem>>
    %84 = vector.broadcast %83 : f32 to vector<16x128xf32>
    %85 = arith.addf %82, %84 : vector<16x128xf32>
    %cst_22 = arith.constant 0.000000e+00 : f32
    %86 = vector.broadcast %cst_22 : f32 to vector<16x128xf32>
    %87 = arith.maximumf %85, %86 : vector<16x128xf32>
    %c2_23 = arith.constant 2 : index
    %88 = memref.load %arg4[%c2_23] : memref<20xf32, #tpu.memory_space<smem>>
    %89 = vector.broadcast %88 : f32 to vector<16x128xf32>
    %90 = arith.mulf %89, %87 : vector<16x128xf32>
    %91 = arith.addf %63, %90 : vector<16x128xf32>
    %c12 = arith.constant 12 : index
    %92 = memref.load %arg4[%c12] : memref<20xf32, #tpu.memory_space<smem>>
    %93 = vector.broadcast %92 : f32 to vector<16x128xf32>
    %94 = arith.mulf %93, %87 : vector<16x128xf32>
    %95 = arith.addf %67, %94 : vector<16x128xf32>
    %c12_24 = arith.constant 12 : index
    %96 = memref.load %arg2[%c12_24] : memref<40xf32, #tpu.memory_space<smem>>
    %97 = vector.broadcast %96 : f32 to vector<16x128xf32>
    %98 = arith.mulf %97, %1 : vector<16x128xf32>
    %c13 = arith.constant 13 : index
    %99 = memref.load %arg2[%c13] : memref<40xf32, #tpu.memory_space<smem>>
    %100 = vector.broadcast %99 : f32 to vector<16x128xf32>
    %101 = arith.mulf %100, %3 : vector<16x128xf32>
    %102 = arith.addf %98, %101 : vector<16x128xf32>
    %c14 = arith.constant 14 : index
    %103 = memref.load %arg2[%c14] : memref<40xf32, #tpu.memory_space<smem>>
    %104 = vector.broadcast %103 : f32 to vector<16x128xf32>
    %105 = arith.mulf %104, %5 : vector<16x128xf32>
    %106 = arith.addf %102, %105 : vector<16x128xf32>
    %c15 = arith.constant 15 : index
    %107 = memref.load %arg2[%c15] : memref<40xf32, #tpu.memory_space<smem>>
    %108 = vector.broadcast %107 : f32 to vector<16x128xf32>
    %109 = arith.mulf %108, %7 : vector<16x128xf32>
    %110 = arith.addf %106, %109 : vector<16x128xf32>
    %c3_25 = arith.constant 3 : index
    %111 = memref.load %arg3[%c3_25] : memref<10xf32, #tpu.memory_space<smem>>
    %112 = vector.broadcast %111 : f32 to vector<16x128xf32>
    %113 = arith.addf %110, %112 : vector<16x128xf32>
    %cst_26 = arith.constant 0.000000e+00 : f32
    %114 = vector.broadcast %cst_26 : f32 to vector<16x128xf32>
    %115 = arith.maximumf %113, %114 : vector<16x128xf32>
    %c3_27 = arith.constant 3 : index
    %116 = memref.load %arg4[%c3_27] : memref<20xf32, #tpu.memory_space<smem>>
    %117 = vector.broadcast %116 : f32 to vector<16x128xf32>
    %118 = arith.mulf %117, %115 : vector<16x128xf32>
    %119 = arith.addf %91, %118 : vector<16x128xf32>
    %c13_28 = arith.constant 13 : index
    %120 = memref.load %arg4[%c13_28] : memref<20xf32, #tpu.memory_space<smem>>
    %121 = vector.broadcast %120 : f32 to vector<16x128xf32>
    %122 = arith.mulf %121, %115 : vector<16x128xf32>
    %123 = arith.addf %95, %122 : vector<16x128xf32>
    %c16 = arith.constant 16 : index
    %124 = memref.load %arg2[%c16] : memref<40xf32, #tpu.memory_space<smem>>
    %125 = vector.broadcast %124 : f32 to vector<16x128xf32>
    %126 = arith.mulf %125, %1 : vector<16x128xf32>
    %c17 = arith.constant 17 : index
    %127 = memref.load %arg2[%c17] : memref<40xf32, #tpu.memory_space<smem>>
    %128 = vector.broadcast %127 : f32 to vector<16x128xf32>
    %129 = arith.mulf %128, %3 : vector<16x128xf32>
    %130 = arith.addf %126, %129 : vector<16x128xf32>
    %c18 = arith.constant 18 : index
    %131 = memref.load %arg2[%c18] : memref<40xf32, #tpu.memory_space<smem>>
    %132 = vector.broadcast %131 : f32 to vector<16x128xf32>
    %133 = arith.mulf %132, %5 : vector<16x128xf32>
    %134 = arith.addf %130, %133 : vector<16x128xf32>
    %c19 = arith.constant 19 : index
    %135 = memref.load %arg2[%c19] : memref<40xf32, #tpu.memory_space<smem>>
    %136 = vector.broadcast %135 : f32 to vector<16x128xf32>
    %137 = arith.mulf %136, %7 : vector<16x128xf32>
    %138 = arith.addf %134, %137 : vector<16x128xf32>
    %c4_29 = arith.constant 4 : index
    %139 = memref.load %arg3[%c4_29] : memref<10xf32, #tpu.memory_space<smem>>
    %140 = vector.broadcast %139 : f32 to vector<16x128xf32>
    %141 = arith.addf %138, %140 : vector<16x128xf32>
    %cst_30 = arith.constant 0.000000e+00 : f32
    %142 = vector.broadcast %cst_30 : f32 to vector<16x128xf32>
    %143 = arith.maximumf %141, %142 : vector<16x128xf32>
    %c4_31 = arith.constant 4 : index
    %144 = memref.load %arg4[%c4_31] : memref<20xf32, #tpu.memory_space<smem>>
    %145 = vector.broadcast %144 : f32 to vector<16x128xf32>
    %146 = arith.mulf %145, %143 : vector<16x128xf32>
    %147 = arith.addf %119, %146 : vector<16x128xf32>
    %c14_32 = arith.constant 14 : index
    %148 = memref.load %arg4[%c14_32] : memref<20xf32, #tpu.memory_space<smem>>
    %149 = vector.broadcast %148 : f32 to vector<16x128xf32>
    %150 = arith.mulf %149, %143 : vector<16x128xf32>
    %151 = arith.addf %123, %150 : vector<16x128xf32>
    %c20 = arith.constant 20 : index
    %152 = memref.load %arg2[%c20] : memref<40xf32, #tpu.memory_space<smem>>
    %153 = vector.broadcast %152 : f32 to vector<16x128xf32>
    %154 = arith.mulf %153, %1 : vector<16x128xf32>
    %c21 = arith.constant 21 : index
    %155 = memref.load %arg2[%c21] : memref<40xf32, #tpu.memory_space<smem>>
    %156 = vector.broadcast %155 : f32 to vector<16x128xf32>
    %157 = arith.mulf %156, %3 : vector<16x128xf32>
    %158 = arith.addf %154, %157 : vector<16x128xf32>
    %c22 = arith.constant 22 : index
    %159 = memref.load %arg2[%c22] : memref<40xf32, #tpu.memory_space<smem>>
    %160 = vector.broadcast %159 : f32 to vector<16x128xf32>
    %161 = arith.mulf %160, %5 : vector<16x128xf32>
    %162 = arith.addf %158, %161 : vector<16x128xf32>
    %c23 = arith.constant 23 : index
    %163 = memref.load %arg2[%c23] : memref<40xf32, #tpu.memory_space<smem>>
    %164 = vector.broadcast %163 : f32 to vector<16x128xf32>
    %165 = arith.mulf %164, %7 : vector<16x128xf32>
    %166 = arith.addf %162, %165 : vector<16x128xf32>
    %c5_33 = arith.constant 5 : index
    %167 = memref.load %arg3[%c5_33] : memref<10xf32, #tpu.memory_space<smem>>
    %168 = vector.broadcast %167 : f32 to vector<16x128xf32>
    %169 = arith.addf %166, %168 : vector<16x128xf32>
    %cst_34 = arith.constant 0.000000e+00 : f32
    %170 = vector.broadcast %cst_34 : f32 to vector<16x128xf32>
    %171 = arith.maximumf %169, %170 : vector<16x128xf32>
    %c5_35 = arith.constant 5 : index
    %172 = memref.load %arg4[%c5_35] : memref<20xf32, #tpu.memory_space<smem>>
    %173 = vector.broadcast %172 : f32 to vector<16x128xf32>
    %174 = arith.mulf %173, %171 : vector<16x128xf32>
    %175 = arith.addf %147, %174 : vector<16x128xf32>
    %c15_36 = arith.constant 15 : index
    %176 = memref.load %arg4[%c15_36] : memref<20xf32, #tpu.memory_space<smem>>
    %177 = vector.broadcast %176 : f32 to vector<16x128xf32>
    %178 = arith.mulf %177, %171 : vector<16x128xf32>
    %179 = arith.addf %151, %178 : vector<16x128xf32>
    %c24 = arith.constant 24 : index
    %180 = memref.load %arg2[%c24] : memref<40xf32, #tpu.memory_space<smem>>
    %181 = vector.broadcast %180 : f32 to vector<16x128xf32>
    %182 = arith.mulf %181, %1 : vector<16x128xf32>
    %c25 = arith.constant 25 : index
    %183 = memref.load %arg2[%c25] : memref<40xf32, #tpu.memory_space<smem>>
    %184 = vector.broadcast %183 : f32 to vector<16x128xf32>
    %185 = arith.mulf %184, %3 : vector<16x128xf32>
    %186 = arith.addf %182, %185 : vector<16x128xf32>
    %c26 = arith.constant 26 : index
    %187 = memref.load %arg2[%c26] : memref<40xf32, #tpu.memory_space<smem>>
    %188 = vector.broadcast %187 : f32 to vector<16x128xf32>
    %189 = arith.mulf %188, %5 : vector<16x128xf32>
    %190 = arith.addf %186, %189 : vector<16x128xf32>
    %c27 = arith.constant 27 : index
    %191 = memref.load %arg2[%c27] : memref<40xf32, #tpu.memory_space<smem>>
    %192 = vector.broadcast %191 : f32 to vector<16x128xf32>
    %193 = arith.mulf %192, %7 : vector<16x128xf32>
    %194 = arith.addf %190, %193 : vector<16x128xf32>
    %c6_37 = arith.constant 6 : index
    %195 = memref.load %arg3[%c6_37] : memref<10xf32, #tpu.memory_space<smem>>
    %196 = vector.broadcast %195 : f32 to vector<16x128xf32>
    %197 = arith.addf %194, %196 : vector<16x128xf32>
    %cst_38 = arith.constant 0.000000e+00 : f32
    %198 = vector.broadcast %cst_38 : f32 to vector<16x128xf32>
    %199 = arith.maximumf %197, %198 : vector<16x128xf32>
    %c6_39 = arith.constant 6 : index
    %200 = memref.load %arg4[%c6_39] : memref<20xf32, #tpu.memory_space<smem>>
    %201 = vector.broadcast %200 : f32 to vector<16x128xf32>
    %202 = arith.mulf %201, %199 : vector<16x128xf32>
    %203 = arith.addf %175, %202 : vector<16x128xf32>
    %c16_40 = arith.constant 16 : index
    %204 = memref.load %arg4[%c16_40] : memref<20xf32, #tpu.memory_space<smem>>
    %205 = vector.broadcast %204 : f32 to vector<16x128xf32>
    %206 = arith.mulf %205, %199 : vector<16x128xf32>
    %207 = arith.addf %179, %206 : vector<16x128xf32>
    %c28 = arith.constant 28 : index
    %208 = memref.load %arg2[%c28] : memref<40xf32, #tpu.memory_space<smem>>
    %209 = vector.broadcast %208 : f32 to vector<16x128xf32>
    %210 = arith.mulf %209, %1 : vector<16x128xf32>
    %c29 = arith.constant 29 : index
    %211 = memref.load %arg2[%c29] : memref<40xf32, #tpu.memory_space<smem>>
    %212 = vector.broadcast %211 : f32 to vector<16x128xf32>
    %213 = arith.mulf %212, %3 : vector<16x128xf32>
    %214 = arith.addf %210, %213 : vector<16x128xf32>
    %c30 = arith.constant 30 : index
    %215 = memref.load %arg2[%c30] : memref<40xf32, #tpu.memory_space<smem>>
    %216 = vector.broadcast %215 : f32 to vector<16x128xf32>
    %217 = arith.mulf %216, %5 : vector<16x128xf32>
    %218 = arith.addf %214, %217 : vector<16x128xf32>
    %c31 = arith.constant 31 : index
    %219 = memref.load %arg2[%c31] : memref<40xf32, #tpu.memory_space<smem>>
    %220 = vector.broadcast %219 : f32 to vector<16x128xf32>
    %221 = arith.mulf %220, %7 : vector<16x128xf32>
    %222 = arith.addf %218, %221 : vector<16x128xf32>
    %c7_41 = arith.constant 7 : index
    %223 = memref.load %arg3[%c7_41] : memref<10xf32, #tpu.memory_space<smem>>
    %224 = vector.broadcast %223 : f32 to vector<16x128xf32>
    %225 = arith.addf %222, %224 : vector<16x128xf32>
    %cst_42 = arith.constant 0.000000e+00 : f32
    %226 = vector.broadcast %cst_42 : f32 to vector<16x128xf32>
    %227 = arith.maximumf %225, %226 : vector<16x128xf32>
    %c7_43 = arith.constant 7 : index
    %228 = memref.load %arg4[%c7_43] : memref<20xf32, #tpu.memory_space<smem>>
    %229 = vector.broadcast %228 : f32 to vector<16x128xf32>
    %230 = arith.mulf %229, %227 : vector<16x128xf32>
    %231 = arith.addf %203, %230 : vector<16x128xf32>
    %c17_44 = arith.constant 17 : index
    %232 = memref.load %arg4[%c17_44] : memref<20xf32, #tpu.memory_space<smem>>
    %233 = vector.broadcast %232 : f32 to vector<16x128xf32>
    %234 = arith.mulf %233, %227 : vector<16x128xf32>
    %235 = arith.addf %207, %234 : vector<16x128xf32>
    %c32 = arith.constant 32 : index
    %236 = memref.load %arg2[%c32] : memref<40xf32, #tpu.memory_space<smem>>
    %237 = vector.broadcast %236 : f32 to vector<16x128xf32>
    %238 = arith.mulf %237, %1 : vector<16x128xf32>
    %c33 = arith.constant 33 : index
    %239 = memref.load %arg2[%c33] : memref<40xf32, #tpu.memory_space<smem>>
    %240 = vector.broadcast %239 : f32 to vector<16x128xf32>
    %241 = arith.mulf %240, %3 : vector<16x128xf32>
    %242 = arith.addf %238, %241 : vector<16x128xf32>
    %c34 = arith.constant 34 : index
    %243 = memref.load %arg2[%c34] : memref<40xf32, #tpu.memory_space<smem>>
    %244 = vector.broadcast %243 : f32 to vector<16x128xf32>
    %245 = arith.mulf %244, %5 : vector<16x128xf32>
    %246 = arith.addf %242, %245 : vector<16x128xf32>
    %c35 = arith.constant 35 : index
    %247 = memref.load %arg2[%c35] : memref<40xf32, #tpu.memory_space<smem>>
    %248 = vector.broadcast %247 : f32 to vector<16x128xf32>
    %249 = arith.mulf %248, %7 : vector<16x128xf32>
    %250 = arith.addf %246, %249 : vector<16x128xf32>
    %c8_45 = arith.constant 8 : index
    %251 = memref.load %arg3[%c8_45] : memref<10xf32, #tpu.memory_space<smem>>
    %252 = vector.broadcast %251 : f32 to vector<16x128xf32>
    %253 = arith.addf %250, %252 : vector<16x128xf32>
    %cst_46 = arith.constant 0.000000e+00 : f32
    %254 = vector.broadcast %cst_46 : f32 to vector<16x128xf32>
    %255 = arith.maximumf %253, %254 : vector<16x128xf32>
    %c8_47 = arith.constant 8 : index
    %256 = memref.load %arg4[%c8_47] : memref<20xf32, #tpu.memory_space<smem>>
    %257 = vector.broadcast %256 : f32 to vector<16x128xf32>
    %258 = arith.mulf %257, %255 : vector<16x128xf32>
    %259 = arith.addf %231, %258 : vector<16x128xf32>
    %c18_48 = arith.constant 18 : index
    %260 = memref.load %arg4[%c18_48] : memref<20xf32, #tpu.memory_space<smem>>
    %261 = vector.broadcast %260 : f32 to vector<16x128xf32>
    %262 = arith.mulf %261, %255 : vector<16x128xf32>
    %263 = arith.addf %235, %262 : vector<16x128xf32>
    %c36 = arith.constant 36 : index
    %264 = memref.load %arg2[%c36] : memref<40xf32, #tpu.memory_space<smem>>
    %265 = vector.broadcast %264 : f32 to vector<16x128xf32>
    %266 = arith.mulf %265, %1 : vector<16x128xf32>
    %c37 = arith.constant 37 : index
    %267 = memref.load %arg2[%c37] : memref<40xf32, #tpu.memory_space<smem>>
    %268 = vector.broadcast %267 : f32 to vector<16x128xf32>
    %269 = arith.mulf %268, %3 : vector<16x128xf32>
    %270 = arith.addf %266, %269 : vector<16x128xf32>
    %c38 = arith.constant 38 : index
    %271 = memref.load %arg2[%c38] : memref<40xf32, #tpu.memory_space<smem>>
    %272 = vector.broadcast %271 : f32 to vector<16x128xf32>
    %273 = arith.mulf %272, %5 : vector<16x128xf32>
    %274 = arith.addf %270, %273 : vector<16x128xf32>
    %c39 = arith.constant 39 : index
    %275 = memref.load %arg2[%c39] : memref<40xf32, #tpu.memory_space<smem>>
    %276 = vector.broadcast %275 : f32 to vector<16x128xf32>
    %277 = arith.mulf %276, %7 : vector<16x128xf32>
    %278 = arith.addf %274, %277 : vector<16x128xf32>
    %c9_49 = arith.constant 9 : index
    %279 = memref.load %arg3[%c9_49] : memref<10xf32, #tpu.memory_space<smem>>
    %280 = vector.broadcast %279 : f32 to vector<16x128xf32>
    %281 = arith.addf %278, %280 : vector<16x128xf32>
    %cst_50 = arith.constant 0.000000e+00 : f32
    %282 = vector.broadcast %cst_50 : f32 to vector<16x128xf32>
    %283 = arith.maximumf %281, %282 : vector<16x128xf32>
    %c9_51 = arith.constant 9 : index
    %284 = memref.load %arg4[%c9_51] : memref<20xf32, #tpu.memory_space<smem>>
    %285 = vector.broadcast %284 : f32 to vector<16x128xf32>
    %286 = arith.mulf %285, %283 : vector<16x128xf32>
    %287 = arith.addf %259, %286 : vector<16x128xf32>
    %c19_52 = arith.constant 19 : index
    %288 = memref.load %arg4[%c19_52] : memref<20xf32, #tpu.memory_space<smem>>
    %289 = vector.broadcast %288 : f32 to vector<16x128xf32>
    %290 = arith.mulf %289, %283 : vector<16x128xf32>
    %291 = arith.addf %263, %290 : vector<16x128xf32>
    %c0_53 = arith.constant 0 : index
    %c0_54 = arith.constant 0 : index
    %c0_55 = arith.constant 0 : index
    %292 = vector.load %arg6[%c0_53, %c0_54, %c0_55] : memref<2x16x128xf32, #tpu.memory_space<vmem>>, vector<1x16x128xf32>
    %293 = vector.shape_cast %292 : vector<1x16x128xf32> to vector<16x128xf32>
    %294 = vector.shape_cast %287 : vector<16x128xf32> to vector<1x16x128xf32>
    tpu.vector_store %arg6[%c0_53, %c0_54, %c0_55], %294 {strides = array<i32>} : memref<2x16x128xf32, #tpu.memory_space<vmem>>, vector<1x16x128xf32>,
    %c1_56 = arith.constant 1 : index
    %c0_57 = arith.constant 0 : index
    %c0_58 = arith.constant 0 : index
    %295 = vector.load %arg6[%c1_56, %c0_57, %c0_58] : memref<2x16x128xf32, #tpu.memory_space<vmem>>, vector<1x16x128xf32>
    %296 = vector.shape_cast %295 : vector<1x16x128xf32> to vector<16x128xf32>
    %297 = vector.shape_cast %291 : vector<16x128xf32> to vector<1x16x128xf32>
    tpu.vector_store %arg6[%c1_56, %c0_57, %c0_58], %297 {strides = array<i32>} : memref<2x16x128xf32, #tpu.memory_space<vmem>>, vector<1x16x128xf32>,
    return
  }
  func.func @transform_0(%arg0: i32) -> (i32, i32, i32) {
    %c0_i32 = arith.constant 0 : i32
    %c0_i32_0 = arith.constant 0 : i32
    %c0_i32_1 = arith.constant 0 : i32
    return %c0_i32, %arg0, %c0_i32_0 : i32, i32, i32
  }
  func.func @transform_1(%arg0: i32) -> i32 {
    %c0_i32 = arith.constant 0 : i32
    %c0_i32_0 = arith.constant 0 : i32
    return %c0_i32 : i32
  }
  func.func @transform_2(%arg0: i32) -> i32 {
    %c0_i32 = arith.constant 0 : i32
    %c0_i32_0 = arith.constant 0 : i32
    return %c0_i32 : i32
  }
  func.func @transform_3(%arg0: i32) -> i32 {
    %c0_i32 = arith.constant 0 : i32
    %c0_i32_0 = arith.constant 0 : i32
    return %c0_i32 : i32
  }
  func.func @transform_4(%arg0: i32) -> i32 {
    %c0_i32 = arith.constant 0 : i32
    %c0_i32_0 = arith.constant 0 : i32
    return %c0_i32 : i32
  }
  func.func @transform_5(%arg0: i32) -> (i32, i32, i32) {
    %c0_i32 = arith.constant 0 : i32
    %c0_i32_0 = arith.constant 0 : i32
    %c0_i32_1 = arith.constant 0 : i32
    return %c0_i32, %arg0, %c0_i32_0 : i32, i32, i32
  }
}

</mosaic_0001>

<bundles_post_ra>
// kernel: tpu_custom_call.1
= control target key start
LH: loop header
LB: loop body
LE: loop exit
PB: predicated region body
PF: predicated region fallthrough
CT: control target
= control target key end

     0   :  { %10 = vsyncpa [#allocation3], 0  ;;  %s1084_s0 = inlined_call_operand.hbm [shape: f32[4,16,128], index: 0, kind: input, shape index: {}]   ;;  %s1085_s1 = inlined_call_operand.vmem [shape: f32[40], index: 1, kind: input, shape index: {}]   ;;  %s1086_s2 = inlined_call_operand.vmem [shape: f32[10], index: 2, kind: input, shape index: {}]   ;;  %s1087_s3 = inlined_call_operand.vmem [shape: f32[20], index: 3, kind: input, shape index: {}]   ;;  %s1088_s4 = inlined_call_operand.vmem [shape: f32[2], index: 4, kind: input, shape index: {}]   ;;  %s1089_s5 = inlined_call_operand.hbm [shape: f32[2,16,128], index: 5, kind: output, shape index: {}]  }
   0x1   :  { %11 = vsyncpa [#allocation5], 0 }
   0x2   :  { %12 = vsyncpa [#allocation8], 0 }
   0x3   :  { %13 = vsyncpa [#allocation11], 0  ;;  %s43_s20 = sshll.u32 %s1086_s2, 4  ;;  %s44_s20 = int_to_ptr.vmem [resolvable:$true] %s43_s20 }
   0x4   :  { %14 = vsyncpa [#allocation4], 0  ;;  %s599_s21 = scalar_lea.vmem %s44_s20, 16  ;;  %p604_p1 = scmp.lt.s32.totalorder %s44_s20, %s44_s20 }
   0x5   :  { %p600_p0 = scmp.ne.s32.totalorder %s44_s20, %s599_s21  ;;  %p605_p2 = scmp.lt.s32.totalorder %s599_s21, %s599_s21 }
   0x7   :  { %p606_p3 = por %p605_p2, %p604_p1 }
   0x9   :  { %p607_p4 = pnand %p606_p3, %p600_p0 }
   0xb   :  { %610 = shalt.err (!%p607_p4)
}
   0xc   :  { %s701_s22 = smov [#allocation7]   ;;  %s702_s23 = smov [#allocation2]  }
   0xd   :  { %46 = dma.vmem_to_smem %s44_s20, 16, %s701_s22, [#allocation8]  }
   0xe   :  { %s20_s24 = sshll.u32 %s702_s23, 4  ;;  %s611_s27 = scalar_lea.hbm %s1084_s0, 1024  ;;  %s21_s24 = int_to_ptr.vmem [resolvable:$true] %s20_s24 }
   0xf   :  { %p612_p5 = scmp.ne.s32.totalorder %s1084_s0, %s611_s27  ;;  %p615_p6 = scmp.lt.u32.totalorder %s611_s27, %s1084_s0 }
  0x11   :  { %p617_p7 = pnand %p615_p6, %p612_p5 }
  0x13   :  { %620 = shalt.err (!%p617_p7)
}
  0x14   :  { %s621_s6 = scalar_lea.vmem %s21_s24, 1024  ;;  %p626_p9 = scmp.lt.s32.totalorder %s21_s24, %s21_s24 }
  0x15   :  { %p622_p8 = scmp.ne.s32.totalorder %s21_s24, %s621_s6  ;;  %p627_p10 = scmp.lt.s32.totalorder %s621_s6, %s621_s6 }
  0x17   :  { %p628_p11 = por %p627_p10, %p626_p9 }
  0x19   :  { %p629_p12 = pnand %p628_p11, %p622_p8 }
  0x1b   :  { %632 = shalt.err (!%p629_p12)
}
  0x1c   :  { %s703_s7 = smov 128   ;;  %s704_s8 = smov 8  }
  0x1d   :  { %26 = dma.hbm_to_vmem [thread:$0]  %s1084_s0, 1024, %s21_s24, [#allocation3], %s703_s7, %s703_s7, %s704_s8  }
  0x1e   :  { %s33_s13 = sshll.u32 %s1085_s1, 4  ;;  %s53_s16 = sshll.u32 %s1087_s3, 4  ;;  %s34_s13 = int_to_ptr.vmem [resolvable:$true] %s33_s13  ;;  %s54_s16 = int_to_ptr.vmem [resolvable:$true] %s53_s16 }
  0x1f   :  { %s633_s17 = scalar_lea.vmem %s34_s13, 16  ;;  %p638_p0 = scmp.lt.s32.totalorder %s34_s13, %s34_s13 }
  0x20   :  { %p634_p13 = scmp.ne.s32.totalorder %s34_s13, %s633_s17  ;;  %p639_p1 = scmp.lt.s32.totalorder %s633_s17, %s633_s17 }
  0x22   :  { %p640_p2 = por %p639_p1, %p638_p0 }
  0x24   :  { %p641_p3 = pnand %p640_p2, %p634_p13 }
  0x26   :  { %644 = shalt.err (!%p641_p3)
}
  0x27   :  { %s705_s18 = smov [#allocation6]   ;;  %s645_s0 = scalar_lea.vmem %s54_s16, 16 }
  0x28   :  { %36 = dma.vmem_to_smem %s34_s13, 16, %s705_s18, [#allocation5]  }
  0x29   :  { %p646_p4 = scmp.ne.s32.totalorder %s54_s16, %s645_s0  ;;  %p650_p5 = scmp.lt.s32.totalorder %s54_s16, %s54_s16 }
  0x2a   :  { %p651_p6 = scmp.lt.s32.totalorder %s645_s0, %s645_s0 }
  0x2c   :  { %p652_p7 = por %p651_p6, %p650_p5 }
  0x2e   :  { %p653_p8 = pnand %p652_p7, %p646_p4 }
  0x30   :  { %656 = shalt.err (!%p653_p8)
}
  0x31   :  { %s706_s1 = smov [#allocation9]   ;;  %s63_s20 = sshll.u32 %s1088_s4, 4  ;;  %s64_s20 = int_to_ptr.vmem [resolvable:$true] %s63_s20 }
  0x32   :  { %56 = dma.vmem_to_smem %s54_s16, 16, %s706_s1, [#allocation8]  }
  0x33   :  { %s657_s21 = scalar_lea.vmem %s64_s20, 16  ;;  %p662_p10 = scmp.lt.s32.totalorder %s64_s20, %s64_s20 }
  0x34   :  { %p658_p9 = scmp.ne.s32.totalorder %s64_s20, %s657_s21  ;;  %p663_p11 = scmp.lt.s32.totalorder %s657_s21, %s657_s21 }
  0x36   :  { %p664_p12 = por %p663_p11, %p662_p10 }
  0x38   :  { %p665_p13 = pnand %p664_p12, %p658_p9 }
  0x3a   :  { %668 = shalt.err (!%p665_p13)
}
  0x3b   :  { %s707_s22 = smov [#allocation10]  }
  0x3c   :  { %66 = dma.vmem_to_smem %s64_s20, 16, %s707_s22, [#allocation11]  }
  0x3d   :  { %691 = dma.done.wait [#allocation3], 1024  }
  0x3e   :  { %692 = vsyncadd [#allocation3], 4294966272 }
  0x3f   :  { %693 = dma.done.wait [#allocation5], 16  }
  0x40   :  { %694 = vsyncadd [#allocation5], 4294967280 }
  0x41   :  { %695 = dma.done.wait [#allocation8], 32  }
  0x42   :  { %696 = vsyncadd [#allocation8], 4294967264 }
  0x43   :  { %697 = dma.done.wait [#allocation11], 16  }
  0x44   :  { %698 = vsyncadd [#allocation11], 4294967280 }
  0x45   :  { %82 = sfence }
  0x46   :  { %s98_s4 = sld [smem:[#allocation6]]  ;;  %s524_s23 = sld [smem:[#allocation6 + $0x1]]  ;;  %v768_v0 = vld [vmem:[#allocation2] sm:$0xff]  ;;  %v770_v1 = vld [vmem:[#allocation2 + $0x8] sm:$0xff]  ;;  %v776_v2 = vld [vmem:[#allocation2 + $0x10] sm:$0xff] }
  0x47   :  { %s525_s24 = sld [smem:[#allocation6 + $0x2]]  ;;  %s766_s25 = sld [smem:[#allocation6 + $0x3]]  ;;  %v778_v3 = vld [vmem:[#allocation2 + $0x18] sm:$0xff]  ;;  %v786_v4 = vld [vmem:[#allocation2 + $0x20] sm:$0xff]  ;;  %v788_v5 = vld [vmem:[#allocation2 + $0x28] sm:$0xff] }
  0x48   :  { %s772_s26 = sld [smem:[#allocation7]]  ;;  %s774_s27 = sld [smem:[#allocation6 + $0x4]]  ;;  %v794_v8 = vld [vmem:[#allocation2 + $0x30] sm:$0xff]  ;;  %v796_v9 = vld [vmem:[#allocation2 + $0x38] sm:$0xff] }
  0x49   :  { %s780_s28 = sld [smem:[#allocation6 + $0x5]]  ;;  %s782_s2 = sld [smem:[#allocation6 + $0x6]] }
  0x4a   :  { %s784_s29 = sld [smem:[#allocation6 + $0x7]]  ;;  %s790_s30 = sld [smem:[#allocation9]] }
  0x4b   :  { %s792_s6 = sld [smem:[#allocation9 + $0xa]]  ;;  %s803_s9 = sld [smem:[#allocation6 + $0x8]] }
  0x4c   :  { %v99_v6 = vstv %s98_s4  ;;  %v103_v7 = vstv %s524_s23  ;;  %s805_s10 = sld [smem:[#allocation6 + $0x9]]  ;;  %s809_s11 = sld [smem:[#allocation10]] }
  0x4d   :  { %v100_v10 = vmul.f32 %v99_v6, %v768_v0  ;;  %v101_v11 = vmul.f32 %v99_v6, %v770_v1  ;;  %v104_v12 = vmul.f32 %v103_v7, %v776_v2  ;;  %v105_v13 = vmul.f32 %v103_v7, %v778_v3  ;;  %s811_s12 = sld [smem:[#allocation10 + $0x1]]  ;;  %s832_s15 = sld [smem:[#allocation6 + $0xa]] }
  0x4e   :  { %v109_v14 = vstv %s525_s24  ;;  %v115_v15 = vstv %s766_s25  ;;  %v139_v22 = vstv %s774_s27  ;;  %s818_s13 = sld [smem:[#allocation7 + $0x1]]  ;;  %v121_v27 = vstv %s772_s26  ;;  %s834_s16 = sld [smem:[#allocation6 + $0xb]] }
  0x4f   :  { %v106_v16 = vadd.f32 %v104_v12, %v100_v10  ;;  %v107_v17 = vadd.f32 %v105_v13, %v101_v11  ;;  %v110_v18 = vmul.f32 %v109_v14, %v786_v4  ;;  %v111_v19 = vmul.f32 %v109_v14, %v788_v5  ;;  %s820_s14 = sld [smem:[#allocation9 + $0x1]]  ;;  %s838_s17 = sld [smem:[#allocation9 + $0xb]] }
  0x50   :  { %v116_v20 = vmul.f32 %v115_v15, %v794_v8  ;;  %v117_v21 = vmul.f32 %v115_v15, %v796_v9  ;;  %v140_v25 = vmul.f32 %v139_v22, %v768_v0  ;;  %v141_v26 = vmul.f32 %v139_v22, %v770_v1  ;;  %s842_s18 = sld [smem:[#allocation6 + $0xc]]  ;;  %s848_s0 = sld [smem:[#allocation7 + $0x2]] }
  0x51   :  { %v112_v23 = vadd.f32 %v110_v18, %v106_v16  ;;  %v113_v24 = vadd.f32 %v111_v19, %v107_v17  ;;  %v143_v28 = vstv %s780_s28  ;;  %v149_v29 = vstv %s782_s2  ;;  %s850_s1 = sld [smem:[#allocation9 + $0x2]]  ;;  %s856_s3 = sld [smem:[#allocation6 + $0xd]] }
  0x52   :  { %v155_v30 = vstv %s784_s29  ;;  %v144_v33 = vmul.f32 %v143_v28, %v776_v2  ;;  %v145_v34 = vmul.f32 %v143_v28, %v778_v3  ;;  %v127_v35 = vstv %s790_s30  ;;  %s858_s19 = sld [smem:[#allocation6 + $0xe]]  ;;  %s866_s20 = sld [smem:[#allocation9 + $0xc]] }
  0x53   :  { %v118_v31 = vadd.f32 %v116_v20, %v112_v23  ;;  %v119_v32 = vadd.f32 %v117_v21, %v113_v24  ;;  %v133_v36 = vstv %s792_s6  ;;  %v150_v37 = vmul.f32 %v149_v29, %v786_v4  ;;  %s868_s21 = sld [smem:[#allocation6 + $0xf]]  ;;  %s874_s22 = sld [smem:[#allocation7 + $0x3]] }
  0x54   :  { %v151_v38 = vmul.f32 %v149_v29, %v788_v5  ;;  %v146_v41 = vadd.f32 %v144_v33, %v140_v25  ;;  %v147_v42 = vadd.f32 %v145_v34, %v141_v26  ;;  %v156_v43 = vmul.f32 %v155_v30, %v794_v8  ;;  %s878_s4 = sld [smem:[#allocation6 + $0x10]]  ;;  %s880_s23 = sld [smem:[#allocation6 + $0x11]] }
  0x55   :  { %v122_v39 = vadd.f32 %v121_v27, %v118_v31  ;;  %v123_v40 = vadd.f32 %v121_v27, %v119_v32  ;;  %v157_v44 = vmul.f32 %v155_v30, %v796_v9  ;;  %v179_v45 = vstv %s803_s9  ;;  %s888_s24 = sld [smem:[#allocation6 + $0x12]]  ;;  %s890_s25 = sld [smem:[#allocation6 + $0x13]] }
  0x56   :  { %v183_v46 = vstv %s805_s10  ;;  %v152_v49 = vadd.f32 %v150_v37, %v146_v41  ;;  %v153_v50 = vadd.f32 %v151_v38, %v147_v42  ;;  %v180_v51 = vmul.f32 %v179_v45, %v768_v0  ;;  %s896_s26 = sld [smem:[#allocation9 + $0x3]]  ;;  %s898_s27 = sld [smem:[#allocation9 + $0xd]] }
  0x57   :  { %v124_v47 = vmax.f32 %v122_v39, 0.0  ;;  %v125_v48 = vmax.f32 %v123_v40, 0.0  ;;  %v181_v52 = vmul.f32 %v179_v45, %v770_v1  ;;  %v184_v53 = vmul.f32 %v183_v46, %v776_v2  ;;  %s901_s28 = sld [smem:[#allocation7 + $0x4]]  ;;  %s913_s30 = sld [smem:[#allocation6 + $0x15]] }
  0x58   :  { %v185_v54 = vmul.f32 %v183_v46, %v778_v3  ;;  %v95_v55 = vstv %s809_s11  ;;  %v97_v56 = vstv %s811_s12  ;;  %v161_v57 = vstv %s818_s13  ;;  %s903_s2 = sld [smem:[#allocation6 + $0x14]]  ;;  %s917_s6 = sld [smem:[#allocation6 + $0x16]] }
  0x59   :  { %v167_v58 = vstv %s820_s14  ;;  %v128_v59 = vmul.f32 %v127_v35, %v124_v47  ;;  %v129_v60 = vmul.f32 %v127_v35, %v125_v48  ;;  %v158_v61 = vadd.f32 %v156_v43, %v152_v49  ;;  %s907_s29 = sld [smem:[#allocation9 + $0x4]]  ;;  %s919_s9 = sld [smem:[#allocation6 + $0x17]] }
  0x5a   :  { %v159_v62 = vadd.f32 %v157_v44, %v153_v50  ;;  %v134_v63 = vmul.f32 %v133_v36, %v124_v47  ;;  %v135_v6 = vmul.f32 %v133_v36, %v125_v48  ;;  %v186_v7 = vadd.f32 %v184_v53, %v180_v51  ;;  %s925_s10 = sld [smem:[#allocation9 + $0xe]]  ;;  %s929_s11 = sld [smem:[#allocation7 + $0x5]] }
  0x5b   :  { %v187_v10 = vadd.f32 %v185_v54, %v181_v52  ;;  %v162_v11 = vadd.f32 %v161_v57, %v158_v61  ;;  %v189_v13 = vstv %s832_s15  ;;  %v195_v14 = vstv %s834_s16  ;;  %s934_s12 = sld [smem:[#allocation6 + $0x18]]  ;;  %s936_s13 = sld [smem:[#allocation6 + $0x19]] }
  0x5c   :  { %v163_v12 = vadd.f32 %v161_v57, %v159_v62  ;;  %v190_v15 = vmul.f32 %v189_v13, %v786_v4  ;;  %v191_v16 = vmul.f32 %v189_v13, %v788_v5  ;;  %v196_v17 = vmul.f32 %v195_v14, %v794_v8  ;;  %s943_s14 = sld [smem:[#allocation6 + $0x1a]]  ;;  %s945_s15 = sld [smem:[#allocation6 + $0x1b]] }
  0x5d   :  { %v197_v18 = vmul.f32 %v195_v14, %v796_v9  ;;  %v130_v19 = vadd.f32 %v128_v59, %v95_v55  ;;  %v164_v20 = vmax.f32 %v162_v11, 0.0  ;;  %v173_v22 = vstv %s838_s17  ;;  %s953_s16 = sld [smem:[#allocation9 + $0x5]]  ;;  %s955_s17 = sld [smem:[#allocation9 + $0xf]] }
  0x5e   :  { %v165_v21 = vmax.f32 %v163_v12, 0.0  ;;  %v131_v23 = vadd.f32 %v129_v60, %v95_v55  ;;  %v192_v24 = vadd.f32 %v190_v15, %v186_v7  ;;  %v193_v25 = vadd.f32 %v191_v16, %v187_v10 }
  0x5f   :  { %v219_v26 = vstv %s842_s18  ;;  %v136_v27 = vadd.f32 %v134_v63, %v97_v56  ;;  %v137_v28 = vadd.f32 %v135_v6, %v97_v56  ;;  %v201_v29 = vstv %s848_s0  ;;  %s959_s18 = sld [smem:[#allocation7 + $0x6]]  ;;  %s961_s0 = sld [smem:[#allocation6 + $0x1c]] }
  0x60   :  { %v207_v30 = vstv %s850_s1  ;;  %v168_v31 = vmul.f32 %v167_v58, %v164_v20  ;;  %v169_v32 = vmul.f32 %v167_v58, %v165_v21  ;;  %v198_v33 = vadd.f32 %v196_v17, %v192_v24  ;;  %s969_s1 = sld [smem:[#allocation6 + $0x1d]] }
  0x61   :  { %v199_v34 = vadd.f32 %v197_v18, %v193_v25  ;;  %v174_v35 = vmul.f32 %v173_v22, %v164_v20  ;;  %v175_v36 = vmul.f32 %v173_v22, %v165_v21  ;;  %v220_v37 = vmul.f32 %v219_v26, %v768_v0 }
  0x62   :  { %v221_v38 = vmul.f32 %v219_v26, %v770_v1  ;;  %v202_v39 = vadd.f32 %v201_v29, %v198_v33  ;;  %v223_v41 = vstv %s856_s3  ;;  %v229_v42 = vstv %s858_s19  ;;  %s971_s3 = sld [smem:[#allocation6 + $0x1e]] }
  0x63   :  { %v203_v40 = vadd.f32 %v201_v29, %v199_v34  ;;  %v224_v43 = vmul.f32 %v223_v41, %v776_v2  ;;  %v225_v44 = vmul.f32 %v223_v41, %v778_v3  ;;  %v230_v45 = vmul.f32 %v229_v42, %v786_v4  ;;  %s975_s19 = sld [smem:[#allocation9 + $0x6]] }
  0x64   :  { %v231_v46 = vmul.f32 %v229_v42, %v788_v5  ;;  %v204_v47 = vmax.f32 %v202_v39, 0.0  ;;  %v213_v49 = vstv %s866_s20  ;;  %v235_v50 = vstv %s868_s21  ;;  %s981_s20 = sld [smem:[#allocation6 + $0x1f]]  ;;  %s985_s21 = sld [smem:[#allocation9 + $0x10]] }
  0x65   :  { %v205_v48 = vmax.f32 %v203_v40, 0.0  ;;  %v226_v51 = vadd.f32 %v224_v43, %v220_v37  ;;  %v227_v52 = vadd.f32 %v225_v44, %v221_v38  ;;  %v236_v53 = vmul.f32 %v235_v50, %v794_v8 }
  0x66   :  { %v237_v54 = vmul.f32 %v235_v50, %v796_v9  ;;  %v170_v55 = vadd.f32 %v168_v31, %v130_v19  ;;  %v171_v56 = vadd.f32 %v169_v32, %v131_v23  ;;  %v176_v57 = vadd.f32 %v174_v35, %v136_v27 }
  0x67   :  { %v177_v58 = vadd.f32 %v175_v36, %v137_v28  ;;  %v232_v59 = vadd.f32 %v230_v45, %v226_v51  ;;  %v233_v60 = vadd.f32 %v231_v46, %v227_v52  ;;  %v241_v61 = vstv %s874_s22  ;;  %s989_s22 = sld [smem:[#allocation7 + $0x7]] }
  0x68   :  { %v208_v62 = vmul.f32 %v207_v30, %v204_v47  ;;  %v209_v63 = vmul.f32 %v207_v30, %v205_v48  ;;  %v214_v6 = vmul.f32 %v213_v49, %v204_v47  ;;  %v215_v7 = vmul.f32 %v213_v49, %v205_v48 }
  0x69   :  { %v238_v10 = vadd.f32 %v236_v53, %v232_v59  ;;  %v239_v11 = vadd.f32 %v237_v54, %v233_v60  ;;  %v259_v12 = vstv %s878_s4  ;;  %v263_v13 = vstv %s880_s23  ;;  %s991_s4 = sld [smem:[#allocation6 + $0x20]]  ;;  %s993_s23 = sld [smem:[#allocation6 + $0x21]] }
  0x6a   :  { %v260_v14 = vmul.f32 %v259_v12, %v768_v0  ;;  %v261_v15 = vmul.f32 %v259_v12, %v770_v1  ;;  %v264_v16 = vmul.f32 %v263_v13, %v776_v2  ;;  %v265_v17 = vmul.f32 %v263_v13, %v778_v3 }
  0x6b   :  { %v242_v18 = vadd.f32 %v241_v61, %v238_v10  ;;  %v243_v19 = vadd.f32 %v241_v61, %v239_v11  ;;  %v269_v20 = vstv %s888_s24  ;;  %v275_v21 = vstv %s890_s25  ;;  %s997_s24 = sld [smem:[#allocation6 + $0x22]]  ;;  %s999_s25 = sld [smem:[#allocation6 + $0x23]] }
  0x6c   :  { %v266_v22 = vadd.f32 %v264_v16, %v260_v14  ;;  %v267_v23 = vadd.f32 %v265_v17, %v261_v15  ;;  %v270_v24 = vmul.f32 %v269_v20, %v786_v4  ;;  %v271_v25 = vmul.f32 %v269_v20, %v788_v5 }
  0x6d   :  { %v244_v26 = vmax.f32 %v242_v18, 0.0  ;;  %v245_v27 = vmax.f32 %v243_v19, 0.0  ;;  %v276_v28 = vmul.f32 %v275_v21, %v794_v8  ;;  %v277_v29 = vmul.f32 %v275_v21, %v796_v9 }
  0x6e   :  { %v247_v30 = vstv %s896_s26  ;;  %v253_v31 = vstv %s898_s27  ;;  %v272_v32 = vadd.f32 %v270_v24, %v266_v22  ;;  %v273_v33 = vadd.f32 %v271_v25, %v267_v23  ;;  %s1012_s26 = sld [smem:[#allocation6 + $0x24]]  ;;  %s1015_s27 = sld [smem:[#allocation9 + $0x7]] }
  0x6f   :  { %v210_v34 = vadd.f32 %v208_v62, %v170_v55  ;;  %v211_v35 = vadd.f32 %v209_v63, %v171_v56  ;;  %v216_v36 = vadd.f32 %v214_v6, %v176_v57  ;;  %v281_v37 = vstv %s901_s28  ;;  %s1017_s28 = sld [smem:[#allocation9 + $0x11]] }
  0x70   :  { %v217_v38 = vadd.f32 %v215_v7, %v177_v58  ;;  %v278_v39 = vadd.f32 %v276_v28, %v272_v32  ;;  %v279_v40 = vadd.f32 %v277_v29, %v273_v33  ;;  %v299_v41 = vstv %s903_s2  ;;  %s1019_s2 = sld [smem:[#allocation7 + $0x8]] }
  0x71   :  { %v248_v42 = vmul.f32 %v247_v30, %v244_v26  ;;  %v249_v43 = vmul.f32 %v247_v30, %v245_v27  ;;  %v254_v44 = vmul.f32 %v253_v31, %v244_v26  ;;  %v287_v45 = vstv %s907_s29  ;;  %s1025_s29 = sld [smem:[#allocation6 + $0x25]] }
  0x72   :  { %v255_v46 = vmul.f32 %v253_v31, %v245_v27  ;;  %v282_v47 = vadd.f32 %v281_v37, %v278_v39  ;;  %v283_v48 = vadd.f32 %v281_v37, %v279_v40  ;;  %v300_v49 = vmul.f32 %v299_v41, %v768_v0 }
  0x73   :  { %v301_v50 = vmul.f32 %v299_v41, %v770_v1  ;;  %v303_v51 = vstv %s913_s30  ;;  %v309_v52 = vstv %s917_s6  ;;  %v315_v53 = vstv %s919_s9  ;;  %s1027_s30 = sld [smem:[#allocation6 + $0x26]]  ;;  %s1035_s6 = sld [smem:[#allocation6 + $0x27]] }
  0x74   :  { %v284_v54 = vmax.f32 %v282_v47, 0.0  ;;  %v285_v55 = vmax.f32 %v283_v48, 0.0  ;;  %v304_v56 = vmul.f32 %v303_v51, %v776_v2  ;;  %v305_v57 = vmul.f32 %v303_v51, %v778_v3  ;;  %s1039_s9 = sld [smem:[#allocation9 + $0x8]] }
  0x75   :  { %v250_v58 = vadd.f32 %v248_v42, %v210_v34  ;;  %v293_v59 = vstv %s925_s10  ;;  %v310_v60 = vmul.f32 %v309_v52, %v786_v4  ;;  %v311_v61 = vmul.f32 %v309_v52, %v788_v5  ;;  %s1044_s10 = sld [smem:[#allocation9 + $0x12]] }
  0x76   :  { %v251_v62 = vadd.f32 %v249_v43, %v211_v35  ;;  %v256_v63 = vadd.f32 %v254_v44, %v216_v36  ;;  %v257_v6 = vadd.f32 %v255_v46, %v217_v38  ;;  %v321_v7 = vstv %s929_s11  ;;  %s1051_s11 = sld [smem:[#allocation7 + $0x9]] }
  0x77   :  { %v306_v10 = vadd.f32 %v304_v56, %v300_v49  ;;  %v307_v11 = vadd.f32 %v305_v57, %v301_v50  ;;  %v316_v12 = vmul.f32 %v315_v53, %v794_v8  ;;  %v317_v13 = vmul.f32 %v315_v53, %v796_v9 }
  0x78   :  { %v288_v14 = vmul.f32 %v287_v45, %v284_v54  ;;  %v289_v15 = vmul.f32 %v287_v45, %v285_v55  ;;  %v294_v16 = vmul.f32 %v293_v59, %v284_v54  ;;  %v295_v17 = vmul.f32 %v293_v59, %v285_v55 }
  0x79   :  { %v312_v18 = vadd.f32 %v310_v60, %v306_v10  ;;  %v313_v19 = vadd.f32 %v311_v61, %v307_v11  ;;  %v339_v20 = vstv %s934_s12  ;;  %v343_v21 = vstv %s936_s13  ;;  %s1058_s12 = sld [smem:[#allocation9 + $0x9]]  ;;  %s1060_s13 = sld [smem:[#allocation9 + $0x13]] }
  0x7a   :  { %v340_v22 = vmul.f32 %v339_v20, %v768_v0  ;;  %v341_v23 = vmul.f32 %v339_v20, %v770_v1  ;;  %v344_v24 = vmul.f32 %v343_v21, %v776_v2  ;;  %v345_v25 = vmul.f32 %v343_v21, %v778_v3 }
  0x7b   :  { %v318_v26 = vadd.f32 %v316_v12, %v312_v18  ;;  %v319_v27 = vadd.f32 %v317_v13, %v313_v19  ;;  %v349_v28 = vstv %s943_s14  ;;  %v355_v29 = vstv %s945_s15  ;;  %s708_s14 = smov [#allocation12]  }
  0x7c   :  { %v346_v30 = vadd.f32 %v344_v24, %v340_v22  ;;  %v347_v31 = vadd.f32 %v345_v25, %v341_v23  ;;  %v350_v32 = vmul.f32 %v349_v28, %v786_v4  ;;  %v351_v33 = vmul.f32 %v349_v28, %v788_v5  ;;  %s508_s15 = sshll.u32 %s708_s14, 4  ;;  %s509_s15 = int_to_ptr.vmem [resolvable:$true] %s508_s15 }
  0x7d   :  { %v322_v34 = vadd.f32 %v321_v7, %v318_v26  ;;  %v323_v35 = vadd.f32 %v321_v7, %v319_v27  ;;  %v356_v36 = vmul.f32 %v355_v29, %v794_v8  ;;  %v357_v37 = vmul.f32 %v355_v29, %v796_v9  ;;  %p674_p1 = scmp.lt.s32.totalorder %s509_s15, %s509_s15 }
  0x7e   :  { %v327_v38 = vstv %s953_s16  ;;  %v333_v39 = vstv %s955_s17  ;;  %v352_v40 = vadd.f32 %v350_v32, %v346_v30  ;;  %v353_v41 = vadd.f32 %v351_v33, %v347_v31  ;;  %s669_s16 = scalar_lea.vmem %s509_s15, 512 }
  0x7f   :  { %v290_v42 = vadd.f32 %v288_v14, %v250_v58  ;;  %v324_v43 = vmax.f32 %v322_v34, 0.0  ;;  %v325_v44 = vmax.f32 %v323_v35, 0.0  ;;  %v361_v45 = vstv %s959_s18  ;;  %p670_p0 = scmp.ne.s32.totalorder %s509_s15, %s669_s16  ;;  %p675_p2 = scmp.lt.s32.totalorder %s669_s16, %s669_s16 }
  0x80   :  { %v291_v46 = vadd.f32 %v289_v15, %v251_v62  ;;  %v358_v47 = vadd.f32 %v356_v36, %v352_v40  ;;  %v359_v48 = vadd.f32 %v357_v37, %v353_v41  ;;  %v379_v49 = vstv %s961_s0 }
  0x81   :  { %v296_v50 = vadd.f32 %v294_v16, %v256_v63  ;;  %v297_v51 = vadd.f32 %v295_v17, %v257_v6  ;;  %v328_v52 = vmul.f32 %v327_v38, %v324_v43  ;;  %v329_v53 = vmul.f32 %v327_v38, %v325_v44  ;;  %p676_p3 = por %p675_p2, %p674_p1 }
  0x82   :  { %v362_v54 = vadd.f32 %v361_v45, %v358_v47  ;;  %v363_v55 = vadd.f32 %v361_v45, %v359_v48  ;;  %v383_v56 = vstv %s969_s1  ;;  %v389_v57 = vstv %s971_s3 }
  0x83   :  { %v334_v58 = vmul.f32 %v333_v39, %v324_v43  ;;  %v367_v59 = vstv %s975_s19  ;;  %v380_v60 = vmul.f32 %v379_v49, %v768_v0  ;;  %v381_v61 = vmul.f32 %v379_v49, %v770_v1  ;;  %p677_p4 = pnand %p676_p3, %p670_p0 }
  0x84   :  { %v335_v62 = vmul.f32 %v333_v39, %v325_v44  ;;  %v364_v63 = vmax.f32 %v362_v54, 0.0  ;;  %v384_v6 = vmul.f32 %v383_v56, %v776_v2  ;;  %v385_v7 = vmul.f32 %v383_v56, %v778_v3 }
  0x85   :  { %v365_v10 = vmax.f32 %v363_v55, 0.0  ;;  %v390_v11 = vmul.f32 %v389_v57, %v786_v4  ;;  %v391_v12 = vmul.f32 %v389_v57, %v788_v5  ;;  %v395_v13 = vstv %s981_s20 }
  0x86   :  { %v330_v14 = vadd.f32 %v328_v52, %v290_v42  ;;  %v331_v15 = vadd.f32 %v329_v53, %v291_v46  ;;  %v373_v16 = vstv %s985_s21  ;;  %v386_v17 = vadd.f32 %v384_v6, %v380_v60 }
  0x87   :  { %v387_v18 = vadd.f32 %v385_v7, %v381_v61  ;;  %v396_v19 = vmul.f32 %v395_v13, %v794_v8  ;;  %v397_v20 = vmul.f32 %v395_v13, %v796_v9  ;;  %v336_v21 = vadd.f32 %v334_v58, %v296_v50 }
  0x88   :  { %v337_v22 = vadd.f32 %v335_v62, %v297_v51  ;;  %v368_v23 = vmul.f32 %v367_v59, %v364_v63  ;;  %v401_v24 = vstv %s989_s22  ;;  %v369_v25 = vmul.f32 %v367_v59, %v365_v10 }
  0x89   :  { %v374_v26 = vmul.f32 %v373_v16, %v364_v63  ;;  %v392_v27 = vadd.f32 %v390_v11, %v386_v17  ;;  %v393_v28 = vadd.f32 %v391_v12, %v387_v18  ;;  %v419_v29 = vstv %s991_s4 }
  0x8a   :  { %v423_v30 = vstv %s993_s23  ;;  %v429_v31 = vstv %s997_s24  ;;  %v435_v32 = vstv %s999_s25  ;;  %v420_v35 = vmul.f32 %v419_v29, %v768_v0 }
  0x8b   :  { %v398_v33 = vadd.f32 %v396_v19, %v392_v27  ;;  %v399_v34 = vadd.f32 %v397_v20, %v393_v28  ;;  %v421_v36 = vmul.f32 %v419_v29, %v770_v1  ;;  %v424_v37 = vmul.f32 %v423_v30, %v776_v2 }
  0x8c   :  { %v425_v38 = vmul.f32 %v423_v30, %v778_v3  ;;  %v430_v39 = vmul.f32 %v429_v31, %v786_v4  ;;  %v431_v40 = vmul.f32 %v429_v31, %v788_v5  ;;  %v370_v41 = vadd.f32 %v368_v23, %v330_v14 }
  0x8d   :  { %v375_v42 = vmul.f32 %v373_v16, %v365_v10  ;;  %v402_v43 = vadd.f32 %v401_v24, %v398_v33  ;;  %v403_v44 = vadd.f32 %v401_v24, %v399_v34  ;;  %v426_v45 = vadd.f32 %v424_v37, %v420_v35 }
  0x8e   :  { %v427_v46 = vadd.f32 %v425_v38, %v421_v36  ;;  %v436_v47 = vmul.f32 %v435_v32, %v794_v8  ;;  %v437_v48 = vmul.f32 %v435_v32, %v796_v9  ;;  %v371_v49 = vadd.f32 %v369_v25, %v331_v15 }
  0x8f   :  { %v404_v50 = vmax.f32 %v402_v43, 0.0  ;;  %v405_v51 = vmax.f32 %v403_v44, 0.0  ;;  %v459_v52 = vstv %s1012_s26  ;;  %v407_v53 = vstv %s1015_s27 }
  0x90   :  { %v413_v54 = vstv %s1017_s28  ;;  %v432_v55 = vadd.f32 %v430_v39, %v426_v45  ;;  %v433_v56 = vadd.f32 %v431_v40, %v427_v46  ;;  %v376_v57 = vadd.f32 %v374_v26, %v336_v21 }
  0x91   :  { %v441_v58 = vstv %s1019_s2  ;;  %v460_v59 = vmul.f32 %v459_v52, %v768_v0  ;;  %v461_v60 = vmul.f32 %v459_v52, %v770_v1  ;;  %v463_v63 = vstv %s1025_s29 }
  0x92   :  { %v438_v61 = vadd.f32 %v436_v47, %v432_v55  ;;  %v439_v62 = vadd.f32 %v437_v48, %v433_v56  ;;  %v469_v6 = vstv %s1027_s30  ;;  %v377_v7 = vadd.f32 %v375_v42, %v337_v22 }
  0x93   :  { %v408_v10 = vmul.f32 %v407_v53, %v404_v50  ;;  %v409_v11 = vmul.f32 %v407_v53, %v405_v51  ;;  %v414_v12 = vmul.f32 %v413_v54, %v404_v50  ;;  %v464_v15 = vmul.f32 %v463_v63, %v776_v2 }
  0x94   :  { %v442_v13 = vadd.f32 %v441_v58, %v438_v61  ;;  %v443_v14 = vadd.f32 %v441_v58, %v439_v62  ;;  %v465_v0 = vmul.f32 %v463_v63, %v778_v3  ;;  %v415_v1 = vmul.f32 %v413_v54, %v405_v51 }
  0x95   :  { %v470_v16 = vmul.f32 %v469_v6, %v786_v4  ;;  %v471_v17 = vmul.f32 %v469_v6, %v788_v5  ;;  %v475_v18 = vstv %s1035_s6  ;;  %v466_v21 = vadd.f32 %v464_v15, %v460_v59 }
  0x96   :  { %v444_v19 = vmax.f32 %v442_v13, 0.0  ;;  %v445_v20 = vmax.f32 %v443_v14, 0.0  ;;  %v467_v22 = vadd.f32 %v465_v0, %v461_v60  ;;  %v447_v23 = vstv %s1039_s9 }
  0x97   :  { %v476_v2 = vmul.f32 %v475_v18, %v794_v8  ;;  %v477_v3 = vmul.f32 %v475_v18, %v796_v9  ;;  %v410_v24 = vadd.f32 %v408_v10, %v370_v41  ;;  %v453_v25 = vstv %s1044_s10 }
  0x98   :  { %v411_v4 = vadd.f32 %v409_v11, %v371_v49  ;;  %v416_v5 = vadd.f32 %v414_v12, %v376_v57  ;;  %v472_v26 = vadd.f32 %v470_v16, %v466_v21  ;;  %v473_v27 = vadd.f32 %v471_v17, %v467_v22 }
  0x99   :  { %v417_v28 = vadd.f32 %v415_v1, %v377_v7  ;;  %v448_v29 = vmul.f32 %v447_v23, %v444_v19  ;;  %v449_v30 = vmul.f32 %v447_v23, %v445_v20  ;;  %v481_v31 = vstv %s1051_s11 }
  0x9a   :  { %v454_v32 = vmul.f32 %v453_v25, %v444_v19  ;;  %v455_v33 = vmul.f32 %v453_v25, %v445_v20  ;;  %v478_v34 = vadd.f32 %v476_v2, %v472_v26  ;;  %v479_v35 = vadd.f32 %v477_v3, %v473_v27 }
  0x9b   :  { %v450_v37 = vadd.f32 %v448_v29, %v410_v24  ;;  %v451_v9 = vadd.f32 %v449_v30, %v411_v4  ;;  %v487_v38 = vstv %s1058_s12  ;;  %v493_v39 = vstv %s1060_s13 }
  0x9c   :  { %v482_v36 = vadd.f32 %v481_v31, %v478_v34  ;;  %v483_v8 = vadd.f32 %v481_v31, %v479_v35  ;;  %v456_v40 = vadd.f32 %v454_v32, %v416_v5  ;;  %v457_v41 = vadd.f32 %v455_v33, %v417_v28 }
  0x9e   :  { %v484_v42 = vmax.f32 %v482_v36, 0.0  ;;  %v485_v43 = vmax.f32 %v483_v8, 0.0 }
  0xa0   :  { %v488_v44 = vmul.f32 %v487_v38, %v484_v42  ;;  %v489_v45 = vmul.f32 %v487_v38, %v485_v43  ;;  %v494_v46 = vmul.f32 %v493_v39, %v484_v42  ;;  %v495_v47 = vmul.f32 %v493_v39, %v485_v43 }
  0xa2   :  { %v490_v48 = vadd.f32 %v488_v44, %v450_v37  ;;  %v491_v49 = vadd.f32 %v489_v45, %v451_v9  ;;  %v496_v50 = vadd.f32 %v494_v46, %v456_v40  ;;  %v497_v51 = vadd.f32 %v495_v47, %v457_v41 }
  0xa4   :  { %498 = vst [vmem:[#allocation12] sm:$0xff] %v490_v48  ;;  %499 = vst [vmem:[#allocation12 + $0x8] sm:$0xff] %v491_v49 }
  0xa5   :  { %501 = vst [vmem:[#allocation12 + $0x10] sm:$0xff] %v496_v50  ;;  %502 = vst [vmem:[#allocation12 + $0x18] sm:$0xff] %v497_v51 }
  0xa6   :  { %680 = shalt.err (!%p677_p4)
}
  0xa7   :  { %s681_s0 = scalar_lea.hbm %s1089_s5, 512 }
  0xa8   :  { %p682_p5 = scmp.ne.s32.totalorder %s1089_s5, %s681_s0  ;;  %p685_p6 = scmp.lt.u32.totalorder %s681_s0, %s1089_s5 }
  0xaa   :  { %p687_p7 = pnand %p685_p6, %p682_p5 }
  0xac   :  { %690 = shalt.err (!%p687_p7)
}
  0xad   :  { %514 = dma.vmem_to_hbm [thread:$0]  %s509_s15, 512, %s1089_s5, [#allocation4], %s703_s7, %s703_s7, %s704_s8  }
  0xae   :  { %699 = dma.done.wait [#allocation4], 512  }
  0xaf   :  { %700 = vsyncadd [#allocation4], 4294966784 }
  0xb0   :  { %518 = vsyncpa [#allocation3], 1 }
  0xb1   :  { %519 = vsyncpa [#allocation4], 1 }
  0xb2   :  { %520 = vsyncpa [#allocation5], 1 }
  0xb3   :  { %521 = vsyncpa [#allocation8], 1 }
  0xb4   :  { %522 = vsyncpa [#allocation11], 1 }

</bundles_post_ra>
